<compile_context>
chip_gen: v7x
topology: tpu7x:2x2x1
jax: 0.10.0
libtpu: 0.0.40
codegen_flags: <defaults>
</compile_context>

<pallas_src>
import jax
import jax.numpy as jnp
from jax.experimental import pallas as pl
from jax.experimental.pallas import tpu as pltpu

# Model hyper-parameters (from SmallNN.__init__)
C_IN = 2
C_HID = 50
C_MID = 100
KSIZE = 20
STRIDE = 10

F = C_IN * KSIZE          # 40  : im2col patch width == deconv contribution width
HID_PAD = 128             # C_MID (100) padded to a full lane width
OUT_PAD = 128             # F (40) padded to a full lane width (lane-dense stores)


def _round_up(x, m):
    return ((x + m - 1) // m) * m


def _smallnn_kernel(p_ref, wa_ref, ba_ref, wb_ref, bb_ref, out_ref):
    """Fused hot path over a tile of flattened (batch*time) rows.

    p_ref  : (TM, F)            bf16 im2col'd input rows
    wa_ref : (F, HID_PAD)       bf16 wenc @ w1      (zero-padded 100->128 lanes)
    ba_ref : (1, HID_PAD)       f32  benc @ w1 + b1 (zero-padded)
    wb_ref : (HID_PAD, OUT_PAD) bf16 w2 @ wdec      (zero-padded both dims)
    bb_ref : (1, OUT_PAD)       f32  b2 @ wdec      (zero-padded)
    out_ref: (TM, OUT_PAD)      f32  per-row deconv contributions (lane-dense)
    """
    h = jnp.dot(p_ref[...], wa_ref[...], preferred_element_type=jnp.float32) + ba_ref[...]
    h = jnp.maximum(h, 0.0).astype(jnp.bfloat16)
    out_ref[...] = (
        jnp.dot(h, wb_ref[...], preferred_element_type=jnp.float32) + bb_ref[...]
    )


def fold_params(params):
    """One-time composition + lane padding + bf16 cast of the raw parameters."""
    wenc, benc, w1, b1, w2, b2, wdec, bdec = params
    wa = wenc @ w1                     # (F, C_MID)
    ba = benc @ w1 + b1                # (1, C_MID)
    wb = w2 @ wdec                     # (C_MID, F)
    bb = b2 @ wdec                     # (1, F)

    # Padded lanes of ba stay exactly 0 -> relu keeps them 0 -> the zero rows
    # 100..127 of wb contribute nothing (correctness invariant of the padding).
    wa_p = jnp.zeros((F, HID_PAD), jnp.float32).at[:, :C_MID].set(wa).astype(jnp.bfloat16)
    ba_p = jnp.zeros((1, HID_PAD), jnp.float32).at[:, :C_MID].set(ba)
    wb_p = jnp.zeros((HID_PAD, OUT_PAD), jnp.float32).at[:C_MID, :F].set(wb).astype(jnp.bfloat16)
    bb_p = jnp.zeros((1, OUT_PAD), jnp.float32).at[:, :F].set(bb)
    return (wa_p, ba_p, wb_p, bb_p, bdec)


def smallnn_forward(x, folded_params):
    """x: (B, C_IN, L) float32, NCL like PyTorch. Returns (B, C_IN, L) float32."""
    B, Cin, L = x.shape
    assert Cin == C_IN
    assert KSIZE == 2 * STRIDE        # required by the reshape-based im2col below
    T = (L - KSIZE) // STRIDE + 1     # Conv1d output length

    wa_p, ba_p, wb_p, bb_p, bdec = folded_params

    # --- glue: im2col via reshape/slice/concat (no gather).
    # Patch t covers x[:, :, t*S : t*S + 2*S] = block[t] ++ block[t+1].
    x_trim = x[:, :, : (T + 1) * STRIDE]                       # (B, C, (T+1)*S)
    blocks = x_trim.reshape(B, C_IN, T + 1, STRIDE)            # (B, C, T+1, S)
    patches = jnp.concatenate(
        [blocks[:, :, :T, :], blocks[:, :, 1:, :]], axis=-1)   # (B, C, T, K)
    patches = jnp.transpose(patches, (0, 2, 1, 3)).reshape(B * T, F)  # (B*T, F)
    patches = patches.astype(jnp.bfloat16)

    # --- row tiling: one grid step for small/medium M (no per-step overhead on
    # single-TC v5e/v6e); 512-row tiles for large M (HBM-roofline friendly and
    # gives v7x's two cores work via "parallel").
    M = B * T
    if M <= 1024:
        TM = max(16, _round_up(M, 16))    # 16-row alignment for bf16 sublane packing
    else:
        TM = 512
    M_pad = _round_up(M, TM)
    ntiles = M_pad // TM
    patches = jnp.pad(patches, ((0, M_pad - M), (0, 0)))       # (M_pad, F)

    contrib_pad = pl.pallas_call(
        _smallnn_kernel,
        out_shape=jax.ShapeDtypeStruct((M_pad, OUT_PAD), jnp.float32),
        grid_spec=pltpu.PrefetchScalarGridSpec(
            num_scalar_prefetch=0,
            grid=(ntiles,),
            in_specs=[
                pl.BlockSpec((TM, F), lambda i: (i, 0)),
                pl.BlockSpec((F, HID_PAD), lambda i: (0, 0)),
                pl.BlockSpec((1, HID_PAD), lambda i: (0, 0)),
                pl.BlockSpec((HID_PAD, OUT_PAD), lambda i: (0, 0)),
                pl.BlockSpec((1, OUT_PAD), lambda i: (0, 0)),
            ],
            out_specs=pl.BlockSpec((TM, OUT_PAD), lambda i: (i, 0)),
        ),
        compiler_params=pltpu.CompilerParams(
            dimension_semantics=("parallel",)),
    )(patches, wa_p, ba_p, wb_p, bb_p)

    # --- glue: drop row/lane padding, then overlap-add for ConvTranspose1d (f32).
    contrib = contrib_pad[:M, :F].reshape(B, T, C_IN, KSIZE)   # (B, T, Cout, K)
    c = jnp.transpose(contrib, (0, 2, 1, 3))                   # (B, Cout, T, K)
    out_len = (T - 1) * STRIDE + KSIZE                         # = (T+1)*STRIDE
    c0 = c[..., :STRIDE].reshape(B, C_IN, T * STRIDE)
    c1 = c[..., STRIDE:].reshape(B, C_IN, T * STRIDE)
    out = (jnp.pad(c0, ((0, 0), (0, 0), (0, STRIDE)))
           + jnp.pad(c1, ((0, 0), (0, 0), (STRIDE, 0))))       # overlap-add
    out = out + bdec[None, :, None]                            # ConvTranspose1d bias

    # --- glue: F.pad(out, [0, L - out_len]) (right-pad last dim)
    out = jnp.pad(out, ((0, 0), (0, 0), (0, L - out_len)))
    return out


def init_params(key):
    """Deterministic init; shapes mirror SmallNN.__init__ (reshaped for matmul)."""
    ks = jax.random.split(key, 8)
    # enc: Conv1d(2, 50, 20) weight (50, 2, 20) -> (40, 50)
    wenc = (jax.random.normal(ks[0], (C_HID, C_IN, KSIZE), jnp.float32) * 0.05)
    wenc = wenc.reshape(C_HID, F).T                   # (F, C_HID)
    benc = (jax.random.normal(ks[1], (1, C_HID), jnp.float32) * 0.05)
    # mid: Linear(50,100), Linear(100,50) -- stored transposed for x @ W
    w1 = jax.random.normal(ks[2], (C_HID, C_MID), jnp.float32) * 0.05
    b1 = jax.random.normal(ks[3], (1, C_MID), jnp.float32) * 0.05
    w2 = jax.random.normal(ks[4], (C_MID, C_HID), jnp.float32) * 0.05
    b2 = jax.random.normal(ks[5], (1, C_HID), jnp.float32) * 0.05
    # dec: ConvTranspose1d(50, 2, 20) weight (50, 2, 20) -> (50, 40)
    wdec = jax.random.normal(ks[6], (C_HID, C_IN, KSIZE), jnp.float32) * 0.05
    wdec = wdec.reshape(C_HID, F)                     # (C_HID, F)
    bdec = jax.random.normal(ks[7], (C_IN,), jnp.float32) * 0.05
    return (wenc, benc, w1, b1, w2, b2, wdec, bdec)


if __name__ == "__main__":
    key = jax.random.PRNGKey(0)
    pkey, xkey = jax.random.split(key)
    raw_params = init_params(pkey)
    folded = fold_params(raw_params)          # one-time weight composition + padding

    # Small input consistent with the forward: (batch=2, channels=2, length=167).
    # Conv1d -> T=15, ConvTranspose1d -> 160, pad right by 7 back to 167.
    B, L = 2, 167
    x = jax.random.normal(xkey, (B, C_IN, L), jnp.float32)

    fwd = jax.jit(lambda xx: smallnn_forward(xx, folded))
    out = jax.block_until_ready(fwd(x))
    assert out.shape == (B, C_IN, L), out.shape
    print("KERNEL_OK")
</pallas_src>

<mosaic_0001>
module attributes {stable_mosaic.version = 11 : i64} {
  func.func @_smallnn_kernel(%arg0: i32, %arg1: memref<32x40xbf16, #tpu.memory_space<vmem>>, %arg2: memref<40x128xbf16, #tpu.memory_space<vmem>>, %arg3: memref<1x128xf32, #tpu.memory_space<vmem>>, %arg4: memref<128x128xbf16, #tpu.memory_space<vmem>>, %arg5: memref<1x128xf32, #tpu.memory_space<vmem>>, %arg6: memref<32x128xf32, #tpu.memory_space<vmem>>) attributes {dimension_semantics = [#tpu.dimension_semantics<parallel>], iteration_bounds = array<i64: 1>, scalar_prefetch = 0 : i64, scratch_operands = 0 : i64, tpu.core_type = #tpu.core_type<tc>, window_params = [{transform_indices = @transform_0, window_bounds = array<i64: 32, 40>}, {pipeline_mode = #tpu.pipeline_mode<synchronous>, transform_indices = @transform_1, window_bounds = array<i64: 40, 128>}, {pipeline_mode = #tpu.pipeline_mode<synchronous>, transform_indices = @transform_2, window_bounds = array<i64: 1, 128>}, {pipeline_mode = #tpu.pipeline_mode<synchronous>, transform_indices = @transform_3, window_bounds = array<i64: 128, 128>}, {pipeline_mode = #tpu.pipeline_mode<synchronous>, transform_indices = @transform_4, window_bounds = array<i64: 1, 128>}, {transform_indices = @transform_5, window_bounds = array<i64: 32, 128>}]} {
    %c0 = arith.constant 0 : index
    %c0_0 = arith.constant 0 : index
    %0 = vector.load %arg1[%c0, %c0_0] : memref<32x40xbf16, #tpu.memory_space<vmem>>, vector<32x40xbf16>
    %c0_1 = arith.constant 0 : index
    %c0_2 = arith.constant 0 : index
    %1 = vector.load %arg2[%c0_1, %c0_2] : memref<40x128xbf16, #tpu.memory_space<vmem>>, vector<40x128xbf16>
    %cst = arith.constant dense<0.000000e+00> : vector<32x128xf32>
    %2 = tpu.matmul %0, %1, %cst {dimension_numbers = #tpu.dot_dimension_numbers<[1], [0], [0], [1], [0, 0, 1, 1], [], []>} : vector<32x40xbf16>, vector<40x128xbf16>, vector<32x128xf32> -> vector<32x128xf32>
    %c0_3 = arith.constant 0 : index
    %c0_4 = arith.constant 0 : index
    %3 = vector.load %arg3[%c0_3, %c0_4] : memref<1x128xf32, #tpu.memory_space<vmem>>, vector<1x128xf32>
    %4 = vector.broadcast %3 : vector<1x128xf32> to vector<32x128xf32>
    %5 = arith.addf %2, %4 : vector<32x128xf32>
    %cst_5 = arith.constant 0.000000e+00 : f32
    %6 = vector.broadcast %cst_5 : f32 to vector<32x128xf32>
    %7 = arith.maximumf %5, %6 : vector<32x128xf32>
    %8 = arith.truncf %7 : vector<32x128xf32> to vector<32x128xbf16>
    %c0_6 = arith.constant 0 : index
    %c0_7 = arith.constant 0 : index
    %9 = vector.load %arg4[%c0_6, %c0_7] : memref<128x128xbf16, #tpu.memory_space<vmem>>, vector<128x128xbf16>
    %cst_8 = arith.constant dense<0.000000e+00> : vector<32x128xf32>
    %10 = tpu.matmul %8, %9, %cst_8 {dimension_numbers = #tpu.dot_dimension_numbers<[1], [0], [0], [1], [0, 0, 1, 1], [], []>} : vector<32x128xbf16>, vector<128x128xbf16>, vector<32x128xf32> -> vector<32x128xf32>
    %c0_9 = arith.constant 0 : index
    %c0_10 = arith.constant 0 : index
    %11 = vector.load %arg5[%c0_9, %c0_10] : memref<1x128xf32, #tpu.memory_space<vmem>>, vector<1x128xf32>
    %12 = vector.broadcast %11 : vector<1x128xf32> to vector<32x128xf32>
    %13 = arith.addf %10, %12 : vector<32x128xf32>
    %c0_11 = arith.constant 0 : index
    %c0_12 = arith.constant 0 : index
    %14 = vector.load %arg6[%c0_11, %c0_12] : memref<32x128xf32, #tpu.memory_space<vmem>>, vector<32x128xf32>
    tpu.vector_store %arg6[%c0_11, %c0_12], %13 {strides = array<i32>} : memref<32x128xf32, #tpu.memory_space<vmem>>, vector<32x128xf32>,
    return
  }
  func.func @transform_0(%arg0: i32) -> (i32, i32) {
    %c0_i32 = arith.constant 0 : i32
    %c0_i32_0 = arith.constant 0 : i32
    return %arg0, %c0_i32 : i32, i32
  }
  func.func @transform_1(%arg0: i32) -> (i32, i32) {
    %c0_i32 = arith.constant 0 : i32
    %c0_i32_0 = arith.constant 0 : i32
    %c0_i32_1 = arith.constant 0 : i32
    return %c0_i32, %c0_i32_0 : i32, i32
  }
  func.func @transform_2(%arg0: i32) -> (i32, i32) {
    %c0_i32 = arith.constant 0 : i32
    %c0_i32_0 = arith.constant 0 : i32
    %c0_i32_1 = arith.constant 0 : i32
    return %c0_i32, %c0_i32_0 : i32, i32
  }
  func.func @transform_3(%arg0: i32) -> (i32, i32) {
    %c0_i32 = arith.constant 0 : i32
    %c0_i32_0 = arith.constant 0 : i32
    %c0_i32_1 = arith.constant 0 : i32
    return %c0_i32, %c0_i32_0 : i32, i32
  }
  func.func @transform_4(%arg0: i32) -> (i32, i32) {
    %c0_i32 = arith.constant 0 : i32
    %c0_i32_0 = arith.constant 0 : i32
    %c0_i32_1 = arith.constant 0 : i32
    return %c0_i32, %c0_i32_0 : i32, i32
  }
  func.func @transform_5(%arg0: i32) -> (i32, i32) {
    %c0_i32 = arith.constant 0 : i32
    %c0_i32_0 = arith.constant 0 : i32
    return %arg0, %c0_i32 : i32, i32
  }
}

</mosaic_0001>

<bundles_post_ra>
// kernel: _lambda_.1
= control target key start
LH: loop header
LB: loop body
LE: loop exit
PB: predicated region body
PF: predicated region fallthrough
CT: control target
= control target key end

     0   :  { %vm62_vm0 = vcmask 326656   ;;  %vm69_vm1 = vcmask 1043456   ;;  %s421_s1 = inlined_call_operand.vmem [shape: bf16[40,128], index: 1, kind: input, shape index: {}]   ;;  %s422_s0 = inlined_call_operand.vmem [shape: bf16[32,40], index: 0, kind: input, shape index: {}]   ;;  %s423_s3 = inlined_call_operand.vmem [shape: bf16[128,128], index: 3, kind: input, shape index: {}]   ;;  %s424_s2 = inlined_call_operand.vmem [shape: f32[1,128], index: 2, kind: input, shape index: {}]   ;;  %s425_s4 = inlined_call_operand.vmem [shape: f32[1,128], index: 4, kind: input, shape index: {}]   ;;  %s426_s5 = inlined_call_operand.vmem [shape: f32[32,128], index: 5, kind: output, shape index: {}]  }
   0x1   :  { %v319_v0 = vld [vmem:[%s421_s1] sm:$0xff]   ;;  %v320_v1 = vld [vmem:[%s421_s1 + $0x8] sm:$0xff]   ;;  %v321_v3 = vld [vmem:[%s421_s1 + $0x10] ss:$0 sps:$4 sm:$0xff]  }
   0x2   :  { %288 = vmatprep.subr.bf16.mxu0 %v319_v0  ;;  %v322_v2 = vld [vmem:[%s422_s0] sm:$0xff]   ;;  %v325_v5 = vld [vmem:[%s423_s3 + $0x8] sm:$0xff]   ;;  %v71_v6 = vsel %vm69_vm1, %v321_v3, 0  ;;  %v326_v7 = vld [vmem:[%s423_s3 + $0x10] sm:$0xff]  }
   0x3   :  { %289 = vmatpush3.bf16.msra.mxu0 %v319_v0  ;;  %294 = vmatprep.mubr.msk.bf16.mxu0 %vm62_vm0, %v322_v2  ;;  %v324_v4 = vld [vmem:[%s423_s3] sm:$0xff]   ;;  %v323_v8 = vld [vmem:[%s422_s0 + $0x8] sm:$0xff]   ;;  %v327_v9 = vld [vmem:[%s423_s3 + $0x18] sm:$0xff]  }
   0x4   :  { %290 = vmatprep.subr.bf16.mxu0 %v320_v1  ;;  %298 = vmatprep.subr.bf16.mxu1 %v324_v4  ;;  %v328_v10 = vld [vmem:[%s423_s3 + $0x20] sm:$0xff]   ;;  %v329_v11 = vld [vmem:[%s423_s3 + $0x28] sm:$0xff]   ;;  %v330_v12 = vld [vmem:[%s423_s3 + $0x30] sm:$0xff]  }
   0x5   :  { %299 = vmatpush3.bf16.msra.mxu1 %v324_v4  ;;  %v331_v13 = vld [vmem:[%s423_s3 + $0x38] sm:$0xff]   ;;  %v256_v14 = vld [vmem:[%s424_s2] ss:$0 sm:$0xff] }
   0x6   :  { %300 = vmatprep.subr.bf16.mxu1 %v325_v5  ;;  %v264_v29 = vld [vmem:[%s425_s4] ss:$0 sm:$0xff] }
   0x7   :  { %291 = vmatpush3.bf16.msra.mxu0 %v320_v1 }
   0x8   :  { %318 = vmatprep.subr.msk.bf16.mxu0 %vm69_vm1, %v321_v3 }
   0x9   :  { %301 = vmatpush3.bf16.msra.mxu1 %v325_v5 }
   0xa   :  { %302 = vmatprep.subr.bf16.mxu1 %v326_v7 }
   0xb   :  { %293 = vmatpush3.bf16.msra.mxu0 %v71_v6 }
   0xd   :  { %303 = vmatpush3.bf16.msra.mxu1 %v326_v7 }
   0xe   :  { %295 = vmatmul.mubr.msk.bf16.vlgmr.msra.gmra.mrb[0].mxu0 %vm62_vm0, %v323_v8  ;;  %304 = vmatprep.subr.bf16.mxu1 %v327_v9 }
  0x11   :  { %305 = vmatpush3.bf16.msra.mxu1 %v327_v9 }
  0x12   :  { %306 = vmatprep.subr.bf16.mxu1 %v328_v10 }
  0x15   :  { %307 = vmatpush3.bf16.msra.mxu1 %v328_v10 }
  0x16   :  { %308 = vmatprep.subr.bf16.mxu1 %v329_v11 }
  0x19   :  { %309 = vmatpush3.bf16.msra.mxu1 %v329_v11 }
  0x1a   :  { %310 = vmatprep.subr.bf16.mxu1 %v330_v12 }
  0x1d   :  { %311 = vmatpush3.bf16.msra.mxu1 %v330_v12 }
  0x1e   :  { %312 = vmatprep.subr.bf16.mxu1 %v331_v13 }
  0x21   :  { %313 = vmatpush3.bf16.msra.mxu1 %v331_v13 }
  0xe1   :  { %v296_v15 = vpop.f32.mrb[0].mxu0 }
  0xe2   :  { %v116_v16 = vadd.f32 %v296_v15, %v256_v14  ;;  %v107_v17 = vpop.f32.mrb[1].mxu0 }
  0xe3   :  { %v108_v18 = vadd.f32 %v256_v14, %v107_v17  ;;  %v297_v19 = vpop.f32.mrb[2].mxu0 }
  0xe4   :  { %v119_v20 = vadd.f32 %v297_v19, %v256_v14  ;;  %v110_v21 = vpop.f32.mrb[3].mxu0  ;;  %v124_v23 = vmax.f32 %v116_v16, 0.0 }
  0xe5   :  { %v111_v22 = vadd.f32 %v256_v14, %v110_v21  ;;  %v122_v25 = vmax.f32 %v108_v18, 0.0 }
  0xe6   :  { %v125_v24 = vmax.f32 %v119_v20, 0.0 }
  0xe7   :  { %v123_v26 = vmax.f32 %v111_v22, 0.0 }
  0xe8   :  { %v127_v27 = vpack.c.bf16 %v125_v24, %v124_v23 }
  0xe9   :  { %v126_v28 = vpack.c.bf16 %v123_v26, %v122_v25 }
  0xeb   :  { %314 = vmatprep.mubr.bf16.mxu1 %v126_v28 }
  0xec   :  { %315 = vmatmul.mubr.bf16.vlgmr.msra.gmra.mrb[0].mxu1 %v127_v27 }
 0x1bf   :  { %v316_v30 = vpop.f32.mrb[0].mxu1 }
 0x1c0   :  { %v242_v31 = vadd.f32 %v316_v30, %v264_v29  ;;  %v233_v32 = vpop.f32.mrb[1].mxu1 }
 0x1c1   :  { %v234_v33 = vadd.f32 %v264_v29, %v233_v32  ;;  %v317_v34 = vpop.f32.mrb[2].mxu1 }
 0x1c2   :  { %250 = vst [vmem:[%s426_s5 + $0x10] sm:$0xff] %v242_v31  ;;  %v245_v35 = vadd.f32 %v317_v34, %v264_v29  ;;  %v236_v36 = vpop.f32.mrb[3].mxu1 }
 0x1c3   :  { %248 = vst [vmem:[%s426_s5] sm:$0xff] %v234_v33  ;;  %v237_v37 = vadd.f32 %v264_v29, %v236_v36 }
 0x1c4   :  { %251 = vst [vmem:[%s426_s5 + $0x18] sm:$0xff] %v245_v35 }
 0x1c5   :  { %249 = vst [vmem:[%s426_s5 + $0x8] sm:$0xff] %v237_v37 }

</bundles_post_ra>
